<compile_context>
chip_gen: v7x
topology: tpu7x:2x2x1
jax: 0.10.0
libtpu: 0.0.40
codegen_flags: <defaults>
</compile_context>

<pallas_src>
import jax
import jax.numpy as jnp
from jax import lax
from jax.experimental import pallas as pl
from jax.experimental.pallas import tpu as pltpu


def _round_up(x, m):
    return (x + m - 1) // m * m


def dnn_kernel(feat_ref,                     # SMEM scalar-prefetch: (nnz_pad,) i32
               bidx_ref,                     # VMEM (1, 1, C) i32: this chunk's batch ids
               invc_ref,                     # VMEM (B_pad, 1) f32: 1/count per batch row
               w1_ref, b1_ref, w2_ref, b2_ref, w3_ref, b3_ref,
               table_ref,                    # HBM  (n_features, D_pad) f32 (pl.ANY)
               out_ref,                      # VMEM (B_pad, D_pad) f32, resident accumulator
               rows_ref,                     # VMEM (2, C, D_pad) f32 gather double buffer
               sem_ref):                     # DMA semaphores, one per buffer slot
    i = pl.program_id(0)
    n = pl.num_programs(0)
    C = rows_ref.shape[1]

    def issue_chunk(chunk, slot):
        # Issue C single-row gather DMAs (HBM table -> VMEM slot buffer).
        base = chunk * C

        @pl.loop(0, C)
        def _(r):
            f = feat_ref[base + r]
            pltpu.make_async_copy(
                table_ref.at[pl.ds(f, 1), :],
                rows_ref.at[slot, pl.ds(r, 1), :],
                sem_ref.at[slot]).start()

    @pl.when(i == 0)
    def _():
        out_ref[...] = jnp.zeros_like(out_ref)
        issue_chunk(0, 0)                     # prime slot 0

    slot = lax.rem(i, 2)

    # Prefetch the next chunk into the other slot while we process this one.
    @pl.when(i + 1 < n)
    def _():
        issue_chunk(i + 1, 1 - slot)

    # Wait for this chunk's C row copies (per-row descriptors on the slot sem).
    @pl.loop(0, C)
    def _(r):
        pltpu.make_async_copy(
            table_ref.at[pl.ds(0, 1), :],
            rows_ref.at[slot, pl.ds(r, 1), :],
            sem_ref.at[slot]).wait()

    # One-hot scatter-accumulate on the MXU:
    #   out(B_pad, D_pad) += onehot(B_pad, C) @ rows(C, D_pad)
    # Padded entries carry batch index -1 -> all-zero one-hot column -> no-op.
    rows = rows_ref[slot]                                       # (C, D_pad) f32
    bvec = bidx_ref[0]                                          # (1, C) i32
    B_pad = out_ref.shape[0]
    row_ids = lax.broadcasted_iota(jnp.int32, (B_pad, C), 0)
    onehot = (row_ids == bvec).astype(jnp.float32)              # (B_pad, C)
    out_ref[...] += jnp.dot(onehot, rows, preferred_element_type=jnp.float32)

    # Finalize at the last chunk: mean + 3 x (Linear + ReLU), in place.
    @pl.when(i == n - 1)
    def _():
        x = out_ref[...] * invc_ref[...]                        # mean, (B_pad, D_pad) f32
        h = jnp.maximum(jnp.dot(x.astype(jnp.bfloat16), w1_ref[...],
                                preferred_element_type=jnp.float32) + b1_ref[...], 0.0)
        h = jnp.maximum(jnp.dot(h.astype(jnp.bfloat16), w2_ref[...],
                                preferred_element_type=jnp.float32) + b2_ref[...], 0.0)
        h = jnp.maximum(jnp.dot(h.astype(jnp.bfloat16), w3_ref[...],
                                preferred_element_type=jnp.float32) + b3_ref[...], 0.0)
        out_ref[...] = h


def _const_spec(shape):
    nd = len(shape)
    return pl.BlockSpec(shape, lambda i, feat, _nd=nd: (0,) * _nd)


def dnn_pallas(feat_p, bidx3, inv_cnt, table_p, w1, b1, w2, b2, w3, b3):
    num_chunks, _, C = bidx3.shape
    B_pad = inv_cnt.shape[0]
    D_pad = table_p.shape[-1]

    grid_spec = pltpu.PrefetchScalarGridSpec(
        num_scalar_prefetch=1,                 # feature indices -> SMEM (drive the DMAs)
        grid=(num_chunks,),
        in_specs=[
            pl.BlockSpec((1, 1, C), lambda i, feat: (i, 0, 0)),   # batch ids, per chunk
            _const_spec((B_pad, 1)),                              # 1/count
            _const_spec((D_pad, D_pad)), _const_spec((1, D_pad)),  # w1, b1
            _const_spec((D_pad, D_pad)), _const_spec((1, D_pad)),  # w2, b2
            _const_spec((D_pad, D_pad)), _const_spec((1, D_pad)),  # w3, b3
            pl.BlockSpec(memory_space=pl.ANY),                     # table stays in HBM
        ],
        out_specs=pl.BlockSpec((B_pad, D_pad), lambda i, feat: (0, 0)),
        scratch_shapes=[
            pltpu.VMEM((2, C, D_pad), jnp.float32),    # gathered-row double buffer
            pltpu.SemaphoreType.DMA((2,)),             # one DMA sem per slot
        ],
    )

    return pl.pallas_call(
        dnn_kernel,
        out_shape=jax.ShapeDtypeStruct((B_pad, D_pad), jnp.float32),
        grid_spec=grid_spec,
        compiler_params=pltpu.CompilerParams(
            dimension_semantics=("arbitrary",)),       # reduction over COO chunks
    )(feat_p, bidx3, inv_cnt, w1, b1, w2, b2, w3, b3, table_p)


def prepare_params(table, params):
    """One-time pad/cast of the embedding table and MLP weights (NOT per-forward)."""
    n_features, dims = table.shape
    D_pad = _round_up(dims, 128)                       # lane-dense embedding dim
    table_p = jnp.pad(table.astype(jnp.float32), ((0, 0), (0, D_pad - dims)))
    pad_w = lambda w: jnp.pad(w, ((0, D_pad - dims), (0, D_pad - dims))
                              ).astype(jnp.bfloat16)
    pad_b = lambda b: jnp.pad(jnp.asarray(b, jnp.float32).reshape(1, -1),
                              ((0, 0), (0, D_pad - dims)))
    (w1, b1), (w2, b2), (w3, b3) = params
    return dict(table=table_p, dims=dims, D_pad=D_pad,
                w1=pad_w(w1), b1=pad_b(b1),
                w2=pad_w(w2), b2=pad_b(b2),
                w3=pad_w(w3), b3=pad_b(b3))


def dnn_forward(batch_indices, feature_indices, batch_size, prepared, chunk=128):
    """Glue: pad/align the sparse COO indices, build per-row inverse counts,
    call the kernel, slice back to the logical shape."""
    dims = prepared["dims"]
    B_pad = _round_up(batch_size, 8)                   # sublane-aligned batch
    nnz = int(batch_indices.shape[0])

    C = max(8, min(int(chunk), _round_up(nnz, 8)))     # entries per grid step
    nnz_pad = _round_up(nnz, C)
    num_chunks = nnz_pad // C

    # Padded COO entries: repeat the last real feature (cheap DMA), batch -1 (no-op).
    feat_p = jnp.pad(feature_indices.astype(jnp.int32), (0, nnz_pad - nnz), mode="edge")
    bidx_p = jnp.pad(batch_indices.astype(jnp.int32), (0, nnz_pad - nnz),
                     constant_values=-1)
    bidx3 = bidx_p.reshape(num_chunks, 1, C)

    # Per-batch-row 1/count, clamped so empty rows give 0 instead of NaN.
    counts = jnp.zeros((B_pad,), jnp.float32).at[batch_indices].add(1.0)
    inv_cnt = (1.0 / jnp.maximum(counts, 1.0)).reshape(B_pad, 1)

    out = dnn_pallas(feat_p, bidx3, inv_cnt, prepared["table"],
                     prepared["w1"], prepared["b1"],
                     prepared["w2"], prepared["b2"],
                     prepared["w3"], prepared["b3"])
    return out[:batch_size, :dims]


def dnn_reference(batch_indices, feature_indices, batch_size, table, params):
    """Pure-JAX reference mirroring the PyTorch forward (f32 pooling, bf16
    matmul inputs / f32 accumulation in the MLP, like the kernel)."""
    embeds = table.astype(jnp.float32)[feature_indices]          # (nnz, D)
    rows = []
    for i in range(batch_size):
        mask = (batch_indices == i)
        cnt = jnp.maximum(jnp.sum(mask.astype(jnp.float32)), 1.0)
        rows.append(jnp.sum(jnp.where(mask[:, None], embeds, 0.0), axis=0) / cnt)
    x = jnp.stack(rows)
    for (w, b) in params:
        x = jnp.maximum(
            jnp.dot(x.astype(jnp.bfloat16), w.astype(jnp.bfloat16),
                    preferred_element_type=jnp.float32) + b.reshape(1, -1), 0.0)
    return x


if __name__ == "__main__":
    key = jax.random.PRNGKey(0)
    n_features, dims, batch_size, nnz_per_row = 64, 32, 4, 4
    ks = jax.random.split(key, 8)

    # Deterministic synthetic parameters (factors embedding table + MLP).
    table = 0.1 * jax.random.normal(ks[0], (n_features, dims), jnp.float32)
    scale = 1.0 / jnp.sqrt(dims)
    w1 = scale * jax.random.normal(ks[1], (dims, dims), jnp.float32)
    b1 = 0.01 * jax.random.normal(ks[2], (1, dims), jnp.float32)
    w2 = scale * jax.random.normal(ks[3], (dims, dims), jnp.float32)
    b2 = 0.01 * jax.random.normal(ks[4], (1, dims), jnp.float32)
    w3 = scale * jax.random.normal(ks[5], (dims, dims), jnp.float32)
    b3 = 0.01 * jax.random.normal(ks[6], (1, dims), jnp.float32)
    params = [(w1, b1), (w2, b2), (w3, b3)]

    # Synthetic sparse COO input: each of the 4 batch rows has 4 active features.
    batch_indices = jnp.repeat(jnp.arange(batch_size, dtype=jnp.int32),
                               nnz_per_row)
    feature_indices = jax.random.randint(
        ks[7], (batch_size * nnz_per_row,), 0, n_features, dtype=jnp.int32)

    prepared = prepare_params(table, params)
    # chunk=8 -> two chunks at this toy nnz so the double buffer is exercised;
    # use chunk=128..512 at production nnz.
    out = dnn_forward(batch_indices, feature_indices, batch_size, prepared, chunk=8)
    out = jax.block_until_ready(out)

    ref = dnn_reference(batch_indices, feature_indices, batch_size, table, params)
    assert out.shape == (batch_size, dims)
    assert jnp.allclose(out, ref, atol=5e-3, rtol=5e-3), "mismatch vs reference"
    print("KERNEL_OK")
</pallas_src>

<mosaic_0001>
module attributes {stable_mosaic.version = 11 : i64} {
  func.func @dnn_kernel(%arg0: i32, %arg1: memref<16xi32, #tpu.memory_space<smem>>, %arg2: memref<1x1x8xi32, #tpu.memory_space<vmem>>, %arg3: memref<8x1xf32, #tpu.memory_space<vmem>>, %arg4: memref<128x128xbf16, #tpu.memory_space<vmem>>, %arg5: memref<1x128xf32, #tpu.memory_space<vmem>>, %arg6: memref<128x128xbf16, #tpu.memory_space<vmem>>, %arg7: memref<1x128xf32, #tpu.memory_space<vmem>>, %arg8: memref<128x128xbf16, #tpu.memory_space<vmem>>, %arg9: memref<1x128xf32, #tpu.memory_space<vmem>>, %arg10: memref<64x128xf32, #tpu.memory_space<any>>, %arg11: memref<8x128xf32, #tpu.memory_space<vmem>>, %arg12: memref<2x8x128xf32, #tpu.memory_space<vmem>>, %arg13: memref<2x!tpu.dma_semaphore, #tpu.memory_space<semaphore_mem>>) attributes {dimension_semantics = [#tpu.dimension_semantics<arbitrary>], iteration_bounds = array<i64: 2>, scalar_prefetch = 1 : i64, scratch_operands = 2 : i64, tpu.core_type = #tpu.core_type<tc>, window_params = [{transform_indices = @transform_0, window_bounds = array<i64: 1, 1, 8>}, {pipeline_mode = #tpu.pipeline_mode<synchronous>, transform_indices = @transform_1, window_bounds = array<i64: 8, 1>}, {pipeline_mode = #tpu.pipeline_mode<synchronous>, transform_indices = @transform_2, window_bounds = array<i64: 128, 128>}, {pipeline_mode = #tpu.pipeline_mode<synchronous>, transform_indices = @transform_3, window_bounds = array<i64: 1, 128>}, {pipeline_mode = #tpu.pipeline_mode<synchronous>, transform_indices = @transform_4, window_bounds = array<i64: 128, 128>}, {pipeline_mode = #tpu.pipeline_mode<synchronous>, transform_indices = @transform_5, window_bounds = array<i64: 1, 128>}, {pipeline_mode = #tpu.pipeline_mode<synchronous>, transform_indices = @transform_6, window_bounds = array<i64: 128, 128>}, {pipeline_mode = #tpu.pipeline_mode<synchronous>, transform_indices = @transform_7, window_bounds = array<i64: 1, 128>}, {}, {pipeline_mode = #tpu.pipeline_mode<synchronous>, transform_indices = @transform_9, window_bounds = array<i64: 8, 128>}]} {
    %c0_i32 = arith.constant 0 : i32
    %0 = arith.cmpi eq, %arg0, %c0_i32 : i32
    %1 = arith.extui %0 : i1 to i32
    %c0_i32_0 = arith.constant 0 : i32
    %2 = arith.cmpi ne, %1, %c0_i32_0 : i32
    scf.if %2 {
      %cst_16 = arith.constant 0.000000e+00 : f32
      %26 = vector.broadcast %cst_16 : f32 to vector<8x128xf32>
      %c0_17 = arith.constant 0 : index
      %c0_18 = arith.constant 0 : index
      %27 = vector.load %arg11[%c0_17, %c0_18] : memref<8x128xf32, #tpu.memory_space<vmem>>, vector<8x128xf32>
      tpu.vector_store %arg11[%c0_17, %c0_18], %26 {strides = array<i32>} : memref<8x128xf32, #tpu.memory_space<vmem>>, vector<8x128xf32>,
      %c0_i32_19 = arith.constant 0 : i32
      %c8_i32_20 = arith.constant 8 : i32
      %28 = arith.addi %c0_i32_19, %c8_i32_20 : i32
      %c1_i32_21 = arith.constant 1 : i32
      scf.for %arg14 = %c0_i32_19 to %28 step %c1_i32_21  : i32 {
        %c1_i32_23 = arith.constant 1 : i32
        %29 = arith.muli %arg14, %c1_i32_23 : i32
        %c0_i32_24 = arith.constant 0 : i32
        %30 = arith.addi %c0_i32_24, %29 : i32
        %c0_i32_25 = arith.constant 0 : i32
        %31 = arith.addi %c0_i32_25, %30 : i32
        %32 = arith.index_cast %31 : i32 to index
        %33 = memref.load %arg1[%32] : memref<16xi32, #tpu.memory_space<smem>>
        %c0_i32_26 = arith.constant 0 : i32
        %c0_i32_27 = arith.constant 0 : i32
        %c0_i32_28 = arith.constant 0 : i32
        %34 = tpu.memref_slice %arg10[%33, %c0_i32_28] : memref<64x128xf32, #tpu.memory_space<any>> -> memref<1x128xf32, #tpu.memory_space<any>>
        %c0_i32_29 = arith.constant 0 : i32
        %35 = tpu.memref_slice %arg12[%c0_i32_26, %30, %c0_i32_29] : memref<2x8x128xf32, #tpu.memory_space<vmem>> -> memref<1x1x128xf32, #tpu.memory_space<vmem>>
        %36 = tpu.memref_squeeze %35 : memref<1x1x128xf32, #tpu.memory_space<vmem>> -> memref<1x128xf32, #tpu.memory_space<vmem>>
        %37 = tpu.memref_slice %arg13[%c0_i32_27] : memref<2x!tpu.dma_semaphore, #tpu.memory_space<semaphore_mem>> -> memref<1x!tpu.dma_semaphore, #tpu.memory_space<semaphore_mem>>
        %38 = tpu.memref_squeeze %37 : memref<1x!tpu.dma_semaphore, #tpu.memory_space<semaphore_mem>> -> memref<!tpu.dma_semaphore, #tpu.memory_space<semaphore_mem>>
        tpu.enqueue_dma source(%34 : memref<1x128xf32, #tpu.memory_space<any>>) target(%36 : memref<1x128xf32, #tpu.memory_space<vmem>>) target_semaphore(%38 : memref<!tpu.dma_semaphore, #tpu.memory_space<semaphore_mem>>)
      }
      %c8_i32_22 = arith.constant 8 : i32
    } else {
    }
    %c2_i32 = arith.constant 2 : i32
    %3 = arith.remsi %arg0, %c2_i32 : i32
    %c1_i32 = arith.constant 1 : i32
    %4 = arith.addi %arg0, %c1_i32 : i32
    %c2_i32_1 = arith.constant 2 : i32
    %5 = arith.cmpi slt, %4, %c2_i32_1 : i32
    %6 = arith.extui %5 : i1 to i32
    %c0_i32_2 = arith.constant 0 : i32
    %7 = arith.cmpi ne, %6, %c0_i32_2 : i32
    scf.if %7 {
      %c1_i32_16 = arith.constant 1 : i32
      %26 = arith.addi %arg0, %c1_i32_16 : i32
      %c1_i32_17 = arith.constant 1 : i32
      %27 = arith.subi %c1_i32_17, %3 : i32
      %c8_i32_18 = arith.constant 8 : i32
      %28 = arith.muli %26, %c8_i32_18 : i32
      %c0_i32_19 = arith.constant 0 : i32
      %c8_i32_20 = arith.constant 8 : i32
      %29 = arith.addi %c0_i32_19, %c8_i32_20 : i32
      %c1_i32_21 = arith.constant 1 : i32
      scf.for %arg14 = %c0_i32_19 to %29 step %c1_i32_21  : i32 {
        %c1_i32_23 = arith.constant 1 : i32
        %30 = arith.muli %arg14, %c1_i32_23 : i32
        %c0_i32_24 = arith.constant 0 : i32
        %31 = arith.addi %c0_i32_24, %30 : i32
        %32 = arith.addi %28, %31 : i32
        %33 = arith.index_cast %32 : i32 to index
        %34 = memref.load %arg1[%33] : memref<16xi32, #tpu.memory_space<smem>>
        %c0_i32_25 = arith.constant 0 : i32
        %35 = tpu.memref_slice %arg10[%34, %c0_i32_25] : memref<64x128xf32, #tpu.memory_space<any>> -> memref<1x128xf32, #tpu.memory_space<any>>
        %c0_i32_26 = arith.constant 0 : i32
        %36 = tpu.memref_slice %arg12[%27, %31, %c0_i32_26] : memref<2x8x128xf32, #tpu.memory_space<vmem>> -> memref<1x1x128xf32, #tpu.memory_space<vmem>>
        %37 = tpu.memref_squeeze %36 : memref<1x1x128xf32, #tpu.memory_space<vmem>> -> memref<1x128xf32, #tpu.memory_space<vmem>>
        %38 = tpu.memref_slice %arg13[%27] : memref<2x!tpu.dma_semaphore, #tpu.memory_space<semaphore_mem>> -> memref<1x!tpu.dma_semaphore, #tpu.memory_space<semaphore_mem>>
        %39 = tpu.memref_squeeze %38 : memref<1x!tpu.dma_semaphore, #tpu.memory_space<semaphore_mem>> -> memref<!tpu.dma_semaphore, #tpu.memory_space<semaphore_mem>>
        tpu.enqueue_dma source(%35 : memref<1x128xf32, #tpu.memory_space<any>>) target(%37 : memref<1x128xf32, #tpu.memory_space<vmem>>) target_semaphore(%39 : memref<!tpu.dma_semaphore, #tpu.memory_space<semaphore_mem>>)
      }
      %c8_i32_22 = arith.constant 8 : i32
    } else {
    }
    %c0_i32_3 = arith.constant 0 : i32
    %c8_i32 = arith.constant 8 : i32
    %8 = arith.addi %c0_i32_3, %c8_i32 : i32
    %c1_i32_4 = arith.constant 1 : i32
    scf.for %arg14 = %c0_i32_3 to %8 step %c1_i32_4  : i32 {
      %c1_i32_16 = arith.constant 1 : i32
      %26 = arith.muli %arg14, %c1_i32_16 : i32
      %c0_i32_17 = arith.constant 0 : i32
      %27 = arith.addi %c0_i32_17, %26 : i32
      %c0_i32_18 = arith.constant 0 : i32
      %c0_i32_19 = arith.constant 0 : i32
      %28 = tpu.memref_slice %arg10[%c0_i32_18, %c0_i32_19] : memref<64x128xf32, #tpu.memory_space<any>> -> memref<1x128xf32, #tpu.memory_space<any>>
      %c0_i32_20 = arith.constant 0 : i32
      %29 = tpu.memref_slice %arg12[%3, %27, %c0_i32_20] : memref<2x8x128xf32, #tpu.memory_space<vmem>> -> memref<1x1x128xf32, #tpu.memory_space<vmem>>
      %30 = tpu.memref_squeeze %29 : memref<1x1x128xf32, #tpu.memory_space<vmem>> -> memref<1x128xf32, #tpu.memory_space<vmem>>
      %31 = tpu.memref_slice %arg13[%3] : memref<2x!tpu.dma_semaphore, #tpu.memory_space<semaphore_mem>> -> memref<1x!tpu.dma_semaphore, #tpu.memory_space<semaphore_mem>>
      %32 = tpu.memref_squeeze %31 : memref<1x!tpu.dma_semaphore, #tpu.memory_space<semaphore_mem>> -> memref<!tpu.dma_semaphore, #tpu.memory_space<semaphore_mem>>
      tpu.wait_dma2 semaphore(%32 : memref<!tpu.dma_semaphore, #tpu.memory_space<semaphore_mem>>) src(%28 : memref<1x128xf32, #tpu.memory_space<any>>) dst(%30 : memref<1x128xf32, #tpu.memory_space<vmem>>)
    }
    %c8_i32_5 = arith.constant 8 : i32
    %9 = arith.index_cast %3 : i32 to index
    %c0 = arith.constant 0 : index
    %c0_6 = arith.constant 0 : index
    %10 = vector.load %arg12[%9, %c0, %c0_6] : memref<2x8x128xf32, #tpu.memory_space<vmem>>, vector<1x8x128xf32>
    %11 = vector.shape_cast %10 : vector<1x8x128xf32> to vector<8x128xf32>
    %c0_7 = arith.constant 0 : index
    %c0_8 = arith.constant 0 : index
    %c0_9 = arith.constant 0 : index
    %12 = vector.load %arg2[%c0_7, %c0_8, %c0_9] : memref<1x1x8xi32, #tpu.memory_space<vmem>>, vector<1x1x8xi32>
    %13 = vector.shape_cast %12 : vector<1x1x8xi32> to vector<1x8xi32>
    %14 = tpu.iota {dimensions = array<i32: 0>} : vector<8x8xi32>
    %15 = vector.broadcast %13 : vector<1x8xi32> to vector<8x8xi32>
    %16 = arith.cmpi eq, %14, %15 : vector<8x8xi32>
    %17 = arith.extui %16 : vector<8x8xi1> to vector<8x8xi32>
    %18 = arith.sitofp %17 : vector<8x8xi32> to vector<8x8xf32>
    %c0_10 = arith.constant 0 : index
    %c0_11 = arith.constant 0 : index
    %19 = vector.load %arg11[%c0_10, %c0_11] : memref<8x128xf32, #tpu.memory_space<vmem>>, vector<8x128xf32>
    %cst = arith.constant dense<0.000000e+00> : vector<8x128xf32>
    %20 = tpu.matmul %18, %11, %cst {dimension_numbers = #tpu.dot_dimension_numbers<[1], [0], [0], [1], [0, 0, 1, 1], [], []>} : vector<8x8xf32>, vector<8x128xf32>, vector<8x128xf32> -> vector<8x128xf32>
    %21 = arith.addf %19, %20 : vector<8x128xf32>
    %c0_12 = arith.constant 0 : index
    %c0_13 = arith.constant 0 : index
    %22 = vector.load %arg11[%c0_12, %c0_13] : memref<8x128xf32, #tpu.memory_space<vmem>>, vector<8x128xf32>
    tpu.vector_store %arg11[%c0_12, %c0_13], %21 {strides = array<i32>} : memref<8x128xf32, #tpu.memory_space<vmem>>, vector<8x128xf32>,
    %c1_i32_14 = arith.constant 1 : i32
    %23 = arith.cmpi eq, %arg0, %c1_i32_14 : i32
    %24 = arith.extui %23 : i1 to i32
    %c0_i32_15 = arith.constant 0 : i32
    %25 = arith.cmpi ne, %24, %c0_i32_15 : i32
    scf.if %25 {
      %c0_16 = arith.constant 0 : index
      %c0_17 = arith.constant 0 : index
      %26 = vector.load %arg11[%c0_16, %c0_17] : memref<8x128xf32, #tpu.memory_space<vmem>>, vector<8x128xf32>
      %c0_18 = arith.constant 0 : index
      %c0_19 = arith.constant 0 : index
      %27 = vector.load %arg3[%c0_18, %c0_19] : memref<8x1xf32, #tpu.memory_space<vmem>>, vector<8x1xf32>
      %28 = vector.broadcast %27 : vector<8x1xf32> to vector<8x128xf32>
      %29 = arith.mulf %26, %28 : vector<8x128xf32>
      %30 = arith.truncf %29 : vector<8x128xf32> to vector<8x128xbf16>
      %c0_20 = arith.constant 0 : index
      %c0_21 = arith.constant 0 : index
      %31 = vector.load %arg4[%c0_20, %c0_21] : memref<128x128xbf16, #tpu.memory_space<vmem>>, vector<128x128xbf16>
      %cst_22 = arith.constant dense<0.000000e+00> : vector<8x128xf32>
      %32 = tpu.matmul %30, %31, %cst_22 {dimension_numbers = #tpu.dot_dimension_numbers<[1], [0], [0], [1], [0, 0, 1, 1], [], []>} : vector<8x128xbf16>, vector<128x128xbf16>, vector<8x128xf32> -> vector<8x128xf32>
      %c0_23 = arith.constant 0 : index
      %c0_24 = arith.constant 0 : index
      %33 = vector.load %arg5[%c0_23, %c0_24] : memref<1x128xf32, #tpu.memory_space<vmem>>, vector<1x128xf32>
      %34 = vector.broadcast %33 : vector<1x128xf32> to vector<8x128xf32>
      %35 = arith.addf %32, %34 : vector<8x128xf32>
      %cst_25 = arith.constant 0.000000e+00 : f32
      %36 = vector.broadcast %cst_25 : f32 to vector<8x128xf32>
      %37 = arith.maximumf %35, %36 : vector<8x128xf32>
      %38 = arith.truncf %37 : vector<8x128xf32> to vector<8x128xbf16>
      %c0_26 = arith.constant 0 : index
      %c0_27 = arith.constant 0 : index
      %39 = vector.load %arg6[%c0_26, %c0_27] : memref<128x128xbf16, #tpu.memory_space<vmem>>, vector<128x128xbf16>
      %cst_28 = arith.constant dense<0.000000e+00> : vector<8x128xf32>
      %40 = tpu.matmul %38, %39, %cst_28 {dimension_numbers = #tpu.dot_dimension_numbers<[1], [0], [0], [1], [0, 0, 1, 1], [], []>} : vector<8x128xbf16>, vector<128x128xbf16>, vector<8x128xf32> -> vector<8x128xf32>
      %c0_29 = arith.constant 0 : index
      %c0_30 = arith.constant 0 : index
      %41 = vector.load %arg7[%c0_29, %c0_30] : memref<1x128xf32, #tpu.memory_space<vmem>>, vector<1x128xf32>
      %42 = vector.broadcast %41 : vector<1x128xf32> to vector<8x128xf32>
      %43 = arith.addf %40, %42 : vector<8x128xf32>
      %cst_31 = arith.constant 0.000000e+00 : f32
      %44 = vector.broadcast %cst_31 : f32 to vector<8x128xf32>
      %45 = arith.maximumf %43, %44 : vector<8x128xf32>
      %46 = arith.truncf %45 : vector<8x128xf32> to vector<8x128xbf16>
      %c0_32 = arith.constant 0 : index
      %c0_33 = arith.constant 0 : index
      %47 = vector.load %arg8[%c0_32, %c0_33] : memref<128x128xbf16, #tpu.memory_space<vmem>>, vector<128x128xbf16>
      %cst_34 = arith.constant dense<0.000000e+00> : vector<8x128xf32>
      %48 = tpu.matmul %46, %47, %cst_34 {dimension_numbers = #tpu.dot_dimension_numbers<[1], [0], [0], [1], [0, 0, 1, 1], [], []>} : vector<8x128xbf16>, vector<128x128xbf16>, vector<8x128xf32> -> vector<8x128xf32>
      %c0_35 = arith.constant 0 : index
      %c0_36 = arith.constant 0 : index
      %49 = vector.load %arg9[%c0_35, %c0_36] : memref<1x128xf32, #tpu.memory_space<vmem>>, vector<1x128xf32>
      %50 = vector.broadcast %49 : vector<1x128xf32> to vector<8x128xf32>
      %51 = arith.addf %48, %50 : vector<8x128xf32>
      %cst_37 = arith.constant 0.000000e+00 : f32
      %52 = vector.broadcast %cst_37 : f32 to vector<8x128xf32>
      %53 = arith.maximumf %51, %52 : vector<8x128xf32>
      %c0_38 = arith.constant 0 : index
      %c0_39 = arith.constant 0 : index
      %54 = vector.load %arg11[%c0_38, %c0_39] : memref<8x128xf32, #tpu.memory_space<vmem>>, vector<8x128xf32>
      tpu.vector_store %arg11[%c0_38, %c0_39], %53 {strides = array<i32>} : memref<8x128xf32, #tpu.memory_space<vmem>>, vector<8x128xf32>,
    } else {
    }
    return
  }
  func.func @transform_0(%arg0: i32, %arg1: memref<16xi32, #tpu.memory_space<smem>>) -> (i32, i32, i32) {
    %c0_i32 = arith.constant 0 : i32
    %c0_i32_0 = arith.constant 0 : i32
    %c0_i32_1 = arith.constant 0 : i32
    return %arg0, %c0_i32, %c0_i32_0 : i32, i32, i32
  }
  func.func @transform_1(%arg0: i32, %arg1: memref<16xi32, #tpu.memory_space<smem>>) -> (i32, i32) {
    %c0_i32 = arith.constant 0 : i32
    %c0_i32_0 = arith.constant 0 : i32
    %c0_i32_1 = arith.constant 0 : i32
    return %c0_i32, %c0_i32_0 : i32, i32
  }
  func.func @transform_2(%arg0: i32, %arg1: memref<16xi32, #tpu.memory_space<smem>>) -> (i32, i32) {
    %c0_i32 = arith.constant 0 : i32
    %c0_i32_0 = arith.constant 0 : i32
    %c0_i32_1 = arith.constant 0 : i32
    return %c0_i32, %c0_i32_0 : i32, i32
  }
  func.func @transform_3(%arg0: i32, %arg1: memref<16xi32, #tpu.memory_space<smem>>) -> (i32, i32) {
    %c0_i32 = arith.constant 0 : i32
    %c0_i32_0 = arith.constant 0 : i32
    %c0_i32_1 = arith.constant 0 : i32
    return %c0_i32, %c0_i32_0 : i32, i32
  }
  func.func @transform_4(%arg0: i32, %arg1: memref<16xi32, #tpu.memory_space<smem>>) -> (i32, i32) {
    %c0_i32 = arith.constant 0 : i32
    %c0_i32_0 = arith.constant 0 : i32
    %c0_i32_1 = arith.constant 0 : i32
    return %c0_i32, %c0_i32_0 : i32, i32
  }
  func.func @transform_5(%arg0: i32, %arg1: memref<16xi32, #tpu.memory_space<smem>>) -> (i32, i32) {
    %c0_i32 = arith.constant 0 : i32
    %c0_i32_0 = arith.constant 0 : i32
    %c0_i32_1 = arith.constant 0 : i32
    return %c0_i32, %c0_i32_0 : i32, i32
  }
  func.func @transform_6(%arg0: i32, %arg1: memref<16xi32, #tpu.memory_space<smem>>) -> (i32, i32) {
    %c0_i32 = arith.constant 0 : i32
    %c0_i32_0 = arith.constant 0 : i32
    %c0_i32_1 = arith.constant 0 : i32
    return %c0_i32, %c0_i32_0 : i32, i32
  }
  func.func @transform_7(%arg0: i32, %arg1: memref<16xi32, #tpu.memory_space<smem>>) -> (i32, i32) {
    %c0_i32 = arith.constant 0 : i32
    %c0_i32_0 = arith.constant 0 : i32
    %c0_i32_1 = arith.constant 0 : i32
    return %c0_i32, %c0_i32_0 : i32, i32
  }
  func.func @transform_9(%arg0: i32, %arg1: memref<16xi32, #tpu.memory_space<smem>>) -> (i32, i32) {
    %c0_i32 = arith.constant 0 : i32
    %c0_i32_0 = arith.constant 0 : i32
    %c0_i32_1 = arith.constant 0 : i32
    return %c0_i32, %c0_i32_0 : i32, i32
  }
}

</mosaic_0001>

<bundles_post_ra>
// kernel: tpu_custom_call.1
= control target key start
LH: loop header
LB: loop body
LE: loop exit
PB: predicated region body
PF: predicated region fallthrough
CT: control target
= control target key end

     0   :  { %s1771_s0 = inlined_call_operand.vmem [shape: s32[16], index: 0, kind: input, shape index: {}]   ;;  %s1772_s1 = inlined_call_operand.vmem [shape: s32[2,1,8], index: 1, kind: input, shape index: {}]   ;;  %s1773_s2 = inlined_call_operand.vmem [shape: f32[8,1], index: 2, kind: input, shape index: {}]   ;;  %s1774_s3 = inlined_call_operand.hbm [shape: bf16[128,128], index: 3, kind: input, shape index: {}]   ;;  %s1775_s4 = inlined_call_operand.vmem [shape: f32[1,128], index: 4, kind: input, shape index: {}]   ;;  %s1776_s5 = inlined_call_operand.hbm [shape: bf16[128,128], index: 5, kind: input, shape index: {}]   ;;  %s1777_s6 = inlined_call_operand.vmem [shape: f32[1,128], index: 6, kind: input, shape index: {}]   ;;  %s1778_s7 = inlined_call_operand.hbm [shape: bf16[128,128], index: 7, kind: input, shape index: {}]   ;;  %s1779_s8 = inlined_call_operand.vmem [shape: f32[1,128], index: 8, kind: input, shape index: {}]   ;;  %s1780_s9 = inlined_call_operand.hbm [shape: f32[64,128], index: 9, kind: input, shape index: {}]   ;;  %s1781_s10 = inlined_call_operand.hbm [shape: f32[8,128], index: 10, kind: output, shape index: {}]  }
   0x1   :  { %1784 = sst [smem:[#allocation24_spill]] %s1774_s3  ;;  %s15_s15 = sshll.u32 %s1771_s0, 4  ;;  %s16_s15 = int_to_ptr.vmem [resolvable:$true] %s15_s15 }
   0x2   :  { %1785 = sst [smem:[#allocation25_spill]] %s1776_s5  ;;  %s1224_s16 = scalar_lea.vmem %s16_s15, 16 }
   0x3   :  { %1786 = sst [smem:[#allocation26_spill]] %s1778_s7  ;;  %p1225_p0 = scmp.ne.s32.totalorder %s16_s15, %s1224_s16 }
   0x4   :  { %p1229_p1 = scmp.lt.s32.totalorder %s16_s15, %s16_s15  ;;  %p1230_p2 = scmp.lt.s32.totalorder %s1224_s16, %s1224_s16 }
   0x6   :  { %p1231_p3 = por %p1230_p2, %p1229_p1 }
   0x8   :  { %p1232_p4 = pnand %p1231_p3, %p1225_p0 }
   0xa   :  { %1235 = shalt.err (!%p1232_p4)  }
   0xb   :  { %s1442_s17 = smov [#allocation5]  }
   0xc   :  { %18 = dma.vmem_to_smem %s16_s15, 16, %s1442_s17, [#allocation4] }
   0xd   :  { %1410 = dma.done.wait [#allocation4], 16 }
   0xe   :  { %1411 = vsyncadd [#allocation4], 4294967280 }
   0xf   :  { %20 = sfence }
  0x10   :  { %21 = vsyncpa [#allocation7], 0 }
  0x11   :  { %22 = vsyncpa [#allocation10], 0 }
  0x12   :  { %23 = vsyncpa [#allocation8], 0  ;;  %s1515_s18 = smov 0  }
  0x13 LB: > { %s1521_s0 = sadd.s32 4294967295, %s1428_s18   ;;  %p970_p5 = scmp.ge.s32.totalorder %s1428_s18, 1  ;;  %s1428_s18 = sphi %s1515_s18, %s29_s18  }
  0x14   : > { %p228_p6 = scmp.lt.s32.totalorder %s1428_s18, 3  ;;  %p1782_p8 = scmp.eq.s32.totalorder %s1521_s0, 0 }
  0x15   : > { %s1443_s20 = smov [#allocation9]   ;;  %s1444_s22 = smov [#allocation6]  }
  0x16   : > { %p1527_p9 = pnand %p970_p5, %p228_p6  ;;  %s259_s21 = sshll.u32 %s1443_s20, 4  ;;  %s260_s21 = int_to_ptr.vmem [resolvable:$true] %s259_s21 }
  0x17   : > { %s243_s23 = sshll.u32 %s1444_s22, 4  ;;  %s1445_s25 = smov [#allocation11]   ;;  %s1539_s23 = int_to_ptr.vmem [resolvable:$true] %s243_s23 }
  0x18   : > { %s1787_s19 = scalar_select %p1527_p9, 1, 0 }
  0x19   : > { %p1136_p10 = pneg %p1527_p9  ;;  %s275_s26 = sshll.u32 %s1445_s25, 4  ;;  %s1541_s26 = int_to_ptr.vmem [resolvable:$true] %s275_s26 }
  0x1a   : > { %s1789_s5 = sld [smem:[#allocation25_spill]] }
  0x1b   : > { %p1535_p11 = pnand %p1782_p8, %p1136_p10 }
  0x1d   : > { %p1551_p13 = pneg %p1535_p11 }
  0x20   : > { %s1236_s29 = scalar_lea.hbm %s1789_s5, 1024 }
  0x21   : > { %p1237_p12 = scmp.ne.s32.totalorder %s1789_s5, %s1236_s29  ;;  %p1243_p2 = scmp.lt.u32.totalorder %s1236_s29, %s1789_s5 }
  0x23   : > { %p1239_p0 = pnand %p1551_p13, %p1237_p12 }
  0x25   : > { %p1240_p1 = pneg %p1239_p0 }
  0x27   : > { %p1245_p3 = pnand %p1243_p2, %p1240_p1 }
  0x29   : > { %1248 = shalt.err (!%p1245_p3)
}
  0x2a   : > { %s1249_s15 = scalar_lea.vmem %s260_s21, 1024  ;;  %p1257_p10 = scmp.lt.s32.totalorder %s260_s21, %s260_s21 }
  0x2b   : > { %p1250_p4 = scmp.ne.s32.totalorder %s260_s21, %s1249_s15  ;;  %p1258_p7 = scmp.lt.s32.totalorder %s1249_s15, %s1249_s15 }
  0x2d   : > { %p1252_p5 = pnand %p1250_p4, %p1551_p13  ;;  %p1259_p8 = por %p1258_p7, %p1257_p10 }
  0x2f   : > { %p1253_p6 = pneg %p1252_p5 }
  0x31   : > { %p1260_p9 = pnand %p1259_p8, %p1253_p6 }
  0x33   : > { %1263 = shalt.err (!%p1260_p9)
}
  0x34   : > { %s1446_s16 = smov 64   ;;  %s1447_s17 = smov 4  }
  0x35   : > { %1142 = dma.hbm_to_vmem [thread:$0]  (!%p1535_p11), %s1789_s5, 1024, %s260_s21, [#allocation10], %s1446_s16, %s1446_s16, %s1447_s17  }
  0x36   : > { %s1791_s3 = sld [smem:[#allocation24_spill]] }
  0x3c   : > { %s1264_s28 = scalar_lea.hbm %s1791_s3, 1024 }
  0x3d   : > { %p1265_p7 = scmp.ne.s32.totalorder %s1791_s3, %s1264_s28  ;;  %p1271_p12 = scmp.lt.u32.totalorder %s1264_s28, %s1791_s3 }
  0x3f   : > { %p1267_p8 = pnand %p1265_p7, %p1551_p13 }
  0x41   : > { %p1268_p9 = pneg %p1267_p8 }
  0x43   : > { %p1273_p0 = pnand %p1271_p12, %p1268_p9 }
  0x45   : > { %1276 = shalt.err (!%p1273_p0)
}
  0x46   : > { %s1277_s21 = scalar_lea.vmem %s1539_s23, 1024  ;;  %p1285_p4 = scmp.lt.s32.totalorder %s1539_s23, %s1539_s23 }
  0x47   : > { %p1278_p1 = scmp.ne.s32.totalorder %s1539_s23, %s1277_s21  ;;  %p1286_p5 = scmp.lt.s32.totalorder %s1277_s21, %s1277_s21 }
  0x49   : > { %p1280_p2 = pnand %p1278_p1, %p1551_p13  ;;  %p1287_p6 = por %p1286_p5, %p1285_p4 }
  0x4b   : > { %p1281_p3 = pneg %p1280_p2 }
  0x4d   : > { %p1288_p10 = pnand %p1287_p6, %p1281_p3 }
  0x4f   : > { %1291 = shalt.err (!%p1288_p10)
}
  0x50   : > { %1139 = dma.hbm_to_vmem [thread:$0]  (!%p1535_p11), %s1791_s3, 1024, %s1539_s23, [#allocation7], %s1446_s16, %s1446_s16, %s1447_s17  }
  0x51   : > { %s1792_s7 = sld [smem:[#allocation26_spill]] }
  0x57   : > { %s1292_s25 = scalar_lea.hbm %s1792_s7, 1024 }
  0x58   : > { %p1293_p7 = scmp.ne.s32.totalorder %s1792_s7, %s1292_s25  ;;  %p1299_p12 = scmp.lt.u32.totalorder %s1292_s25, %s1792_s7 }
  0x5a   : > { %p1295_p8 = pnand %p1293_p7, %p1551_p13 }
  0x5c   : > { %p1296_p9 = pneg %p1295_p8 }
  0x5e   : > { %p1301_p0 = pnand %p1299_p12, %p1296_p9 }
  0x60   : > { %1304 = shalt.err (!%p1301_p0)
}
  0x61   : > { %s1305_s23 = scalar_lea.vmem %s1541_s26, 1024  ;;  %p1313_p4 = scmp.lt.s32.totalorder %s1541_s26, %s1541_s26 }
  0x62   : > { %p1306_p1 = scmp.ne.s32.totalorder %s1541_s26, %s1305_s23  ;;  %p1314_p5 = scmp.lt.s32.totalorder %s1305_s23, %s1305_s23 }
  0x64   : > { %p1308_p2 = pnand %p1306_p1, %p1551_p13  ;;  %p1315_p6 = por %p1314_p5, %p1313_p4 }
  0x66   : > { %p1309_p3 = pneg %p1308_p2 }
  0x68   : > { %p1316_p10 = pnand %p1315_p6, %p1309_p3 }
  0x6a   : > { %1319 = shalt.err (!%p1316_p10)
}
  0x6b   : > { %1145 = dma.hbm_to_vmem [thread:$0]  (!%p1535_p11), %s1792_s7, 1024, %s1541_s26, [#allocation10], %s1446_s16, %s1446_s16, %s1447_s17  }
  0x6c   : > { %p1793_p7 = scmp.ne.s32.totalorder %s1787_s19, 0 }
  0x6d   : > { %p1794_p13 = scmp.eq.s32.totalorder (!%p1793_p7), %s1521_s0, 0 }
  0x6e   : > { %300 = sbr.rel (%p1793_p7) target bundleno = 1137 (0x471), region = 52 }
  0x75   : > { %1413 = dma.done.wait (%p1794_p13), [#allocation7], 1024   ;;  %p1795_p8 = pmov %p1794_p13 }
  0x77   : > { %1415 = vsyncadd (%p1795_p8), [#allocation7], 4294966272  ;;  %p1796_p9 = pmov %p1795_p8 }
  0x78   : > { %p1797_p12 = pmov %p1795_p8 }
  0x79   : > { %1417 = dma.done.wait (%p1796_p9), [#allocation10], 2048  }
  0x7a   : > { %1419 = vsyncadd (%p1797_p12), [#allocation10], 4294965248  ;;  %p335_p0 = scmp.lt.s32.totalorder %s1521_s0, 1  ;;  %p1798_p11 = scmp.ne.s32.totalorder %s1521_s0, 0 }
  0x7b   : > { %v1448_v0 = vmov (!%p1798_p11), 0.0   ;;  %s1642_s16 = smov (!%p1798_p11), 0  }
  0x7c   : > { %s1634_s24 = scalar_select %p335_p0, %s1521_s0, 1 }
  0x7d   : > { %342 = sbr.rel (%p1798_p11) target bundleno = 171 (0xab), region = 68  ;;  %343 = vst [vmem:[#allocation12] sm:$0xff] (!%p1798_p11), %v1448_v0 }
  0x84 LB: >> { %s350_s17 = sld [smem:[#allocation5 + %s1432_s16]]  ;;  %s353_s21 = scalar_lea.vmem [#allocation2], %s1432_s16  ;;  %s1432_s16 = sphi %s1642_s16, %s349_s16  }
  0x85   : >> { %s361_s14 = sshll.u32 %s353_s21, 4  ;;  %s1322_s30 = scalar_lea.hbm %s1780_s9, 1024  ;;  %s362_s14 = int_to_ptr.vmem [resolvable:$true] %s361_s14 }
  0x8a   : >> { %s980_s15 = sshll.u32 %s350_s17, 4 }
  0x8b   : >> { %s352_s25 = scalar_lea.hbm %s1780_s9, %s980_s15 }
  0x8c   : >> { %s1320_s27 = scalar_lea.hbm %s352_s25, 16  ;;  %p1323_p2 = scmp.lt.u32.totalorder %s352_s25, %s1780_s9 }
  0x8d   : >> { %p1321_p1 = scmp.ne.s32.totalorder %s352_s25, %s1320_s27  ;;  %p1324_p3 = scmp.lt.u32.totalorder %s1322_s30, %s1320_s27 }
  0x8e   : >> { %p1326_p5 = scmp.lt.u32.totalorder %s1320_s27, %s352_s25 }
  0x8f   : >> { %p1325_p4 = por %p1324_p3, %p1323_p2 }
  0x91   : >> { %p1327_p6 = por %p1326_p5, %p1325_p4 }
  0x93   : >> { %p1328_p10 = pnand %p1327_p6, %p1321_p1 }
  0x95   : >> { %1331 = shalt.err (!%p1328_p10)  }
  0x96   : >> { %s1332_s13 = scalar_lea.vmem %s362_s14, 16  ;;  %s1449_s19 = smov [#allocation2]  }
  0x97   : >> { %p1333_p7 = scmp.ne.s32.totalorder %s362_s14, %s1332_s13  ;;  %s1334_s26 = sshll.u32 %s1449_s19, 4  ;;  %s1335_s26 = int_to_ptr.vmem [resolvable:$false] %s1334_s26 }
  0x98   : >> { %s1336_s17 = scalar_lea.vmem %s1335_s26, 256  ;;  %p1337_p13 = scmp.lt.s32.totalorder %s362_s14, %s1335_s26 }
  0x99   : >> { %p1338_p8 = scmp.lt.s32.totalorder %s1336_s17, %s1332_s13 }
  0x9b   : >> { %p1339_p9 = por %p1338_p8, %p1337_p13 }
  0x9d   : >> { %p1340_p12 = pnand %p1339_p9, %p1333_p7 }
  0x9f   : >> { %1343 = shalt.err (!%p1340_p12)  }
  0xa0   : >> { %364 = dma.hbm_to_vmem [thread:$0]  %s352_s25, 16, %s362_s14, [#allocation3] }
  0xa1   : >> { %s349_s16 = sadd.s32 1, %s1432_s16  }
  0xa2   : >> { %p346_p0 = scmp.ge.s32.totalorder %s349_s16, 8  }
  0xa4   : > { %348 = sbr.rel (!%p346_p0) target bundleno = 132 (0x84), region = 141 }
  0xab PF: > { %p365_p11 = scmp.lt.s32.totalorder %s1521_s0, 0  ;;  %s366_s21 = ssub.s32 0, %s1521_s0 }
  0xac   : > { %s981_s15 = smin.u32 %s1521_s0, %s366_s21  ;;  %s371_s20 = sadd.s32 1, %s1521_s0 }
  0xad   : > { %s368_s22 = sand.u32 1, %s981_s15   ;;  %p982_p1 = scmp.ge.s32.totalorder %s371_s20, 2 }
  0xae   : > { %s369_s27 = ssub.s32 0, %s368_s22  ;;  %s1024_s16 = sshll.u32 (!%p982_p1), %s1521_s0, 3 }
  0xaf   : > { %s1801_s27 = smov (!%p365_p11, %s369_s27), %s368_s22  ;;  %375 = sbr.rel (%p982_p1) target bundleno = 222 (0xde), region = 83 }
  0xb0   : > { %s376_s14 = ssub.s32 (!%p982_p1), 1, %s1801_s27  ;;  %s1669_s25 = sadd.s32 (!%p982_p1), 8, %s1024_s16 }
  0xb1   : > { %s1671_s28 = smov (!%p982_p1), 0  }
  0xb6 LB: >> { %s985_s29 = sshll.u32 %s376_s14, 3  ;;  %s384_s30 = sadd.s32 %s1436_s28, %s1669_s25  ;;  %s1436_s28 = sphi %s1671_s28, %s383_s28  }
  0xb7   : >> { %s389_s23 = sadd.s32 %s1436_s28, %s985_s29  ;;  %s385_s11 = sld [smem:[#allocation5 + %s384_s30]] }
  0xb8   : >> { %s390_s13 = scalar_lea.vmem [#allocation2], %s389_s23  ;;  %s391_s20 = scalar_lea.sflag [#allocation3], %s376_s14 }
  0xb9   : >> { %s399_s19 = sshll.u32 %s390_s13, 4  ;;  %s1346_s3 = scalar_lea.hbm %s1780_s9, 1024  ;;  %s400_s19 = int_to_ptr.vmem [resolvable:$true] %s399_s19 }
  0xbd   : >> { %s984_s26 = sshll.u32 %s385_s11, 4 }
  0xbe   : >> { %s387_s15 = scalar_lea.hbm %s1780_s9, %s984_s26 }
  0xbf   : >> { %s1344_s22 = scalar_lea.hbm %s387_s15, 16  ;;  %p1347_p3 = scmp.lt.u32.totalorder %s387_s15, %s1780_s9 }
  0xc0   : >> { %p1345_p2 = scmp.ne.s32.totalorder %s387_s15, %s1344_s22  ;;  %p1348_p4 = scmp.lt.u32.totalorder %s1346_s3, %s1344_s22 }
  0xc1   : >> { %p1350_p6 = scmp.lt.u32.totalorder %s1344_s22, %s387_s15 }
  0xc2   : >> { %p1349_p5 = por %p1348_p4, %p1347_p3 }
  0xc4   : >> { %p1351_p10 = por %p1350_p6, %p1349_p5 }
  0xc6   : >> { %p1352_p7 = pnand %p1351_p10, %p1345_p2 }
  0xc8   : >> { %1355 = shalt.err (!%p1352_p7)  }
  0xc9   : >> { %s1356_s29 = scalar_lea.vmem %s400_s19, 16  ;;  %s1450_s30 = smov [#allocation2]  }
  0xca   : >> { %p1357_p13 = scmp.ne.s32.totalorder %s400_s19, %s1356_s29  ;;  %s1358_s23 = sshll.u32 %s1450_s30, 4  ;;  %s1359_s23 = int_to_ptr.vmem [resolvable:$false] %s1358_s23 }
  0xcb   : >> { %s1360_s11 = scalar_lea.vmem %s1359_s23, 256  ;;  %p1361_p8 = scmp.lt.s32.totalorder %s400_s19, %s1359_s23 }
  0xcc   : >> { %p1362_p9 = scmp.lt.s32.totalorder %s1360_s11, %s1356_s29 }
  0xce   : >> { %p1363_p12 = por %p1362_p9, %p1361_p8 }
  0xd0   : >> { %p1364_p0 = pnand %p1363_p12, %p1357_p13 }
  0xd2   : >> { %1367 = shalt.err (!%p1364_p0)  }
  0xd3   : >> { %402 = dma.hbm_to_vmem [thread:$0]  %s387_s15, 16, %s400_s19, %s391_s20 }
  0xd4   : >> { %s383_s28 = sadd.s32 1, %s1436_s28  }
  0xd5   : >> { %p380_p11 = scmp.ge.s32.totalorder %s383_s28, 8  }
  0xd7   : > { %382 = sbr.rel (!%p380_p11) target bundleno = 182 (0xb6), region = 152 }
  0xde PF: > { %s1438_s3 = smov 0  }
  0xdf LB: >> { %s409_s5 = scalar_lea.sflag [#allocation3], %s1801_s27  ;;  %s1440_s3 = sphi %s1438_s3, %s408_s3  }
  0xe0   : >> { %1420 = dma.done.wait %s409_s5, 16 }
  0xe1   : >> { %1421 = vsyncadd %s409_s5, 4294967280  ;;  %s408_s3 = sadd.s32 1, %s1440_s3  }
  0xe2   : >> { %p405_p1 = scmp.ge.s32.totalorder %s408_s3, 8  }
  0xe3   : > { %s986_s7 = sshll.u32 (%p405_p1), %s1801_s27, 3  ;;  %v417_v1 = vlaneseq (%p405_p1)  ;;  %v1451_v2 = vmov (%p405_p1), 0.0   ;;  %vm1452_vm0 = vmmov (%p405_p1), 0   ;;  %s1799_s25 = scalar_lea.vmem (%p405_p1), %s1772_s1, %s1634_s24  ;;  %vm427_vm1 = vcmask (%p405_p1), 64512   ;;  %v426_v7 = vld [vmem:[#allocation12] sm:$0xff] (%p405_p1) }
  0xe4   : > { %407 = sbr.rel (!%p405_p1) target bundleno = 223 (0xdf), region = 163  ;;  %1055 = vmatprep.subr.mxu0 (%p405_p1), %v1451_v2  ;;  %1057 = vmatprep.mubr.msk.f32.mxu0 (%p405_p1), %vm1452_vm0, %v1451_v2  ;;  %v987_v3 = vld [vmem:[%s1799_s25] ss:$0 sm:$0xff] (%p405_p1)  ;;  %s414_s28 = scalar_lea.vmem (%p405_p1), [#allocation2], %s986_s7 }
  0xe5   : > { %v415_v4 = vld [vmem:[%s414_s28] sm:$0xff] (%p405_p1)  ;;  %v418_v5 = vshrl.u32 (%p405_p1), %v417_v1, 7  ;;  %p990_p2 = scmp.ne.s32.totalorder (%p405_p1), %s1521_s0, 1 }
  0xe6   : > { %1056 = vmatpush3.msra.mxu0 (%p405_p1), %v415_v4 }
  0xe7   : > { %vm423_vm2 = vcmp.eq.s32.totalorder (%p405_p1), %v418_v5, %v987_v3 }
  0xe8   : > { %v988_v6 = vsel (%p405_p1), %vm423_vm2, 1.0, %v1451_v2 }
  0xe9   : > { %1058 = vmatmul.mubr.msk.f32.vlgmr.msra.gmra.mrb[0].mxu0 (%p405_p1), %vm427_vm1, %v988_v6 }
  0xeb   : > { %v508_v11 = vld [vmem:[%s1773_s2] sm:$0xff] (!%p990_p2)  ;;  %v1200_v12 = vld [vmem:[#allocation6] sm:$0xff] (!%p990_p2)   ;;  %v1453_v13 = vmov (!%p990_p2), 0   ;;  %v1454_v14 = vmov (!%p990_p2), 0.0   ;;  %v1201_v15 = vld [vmem:[#allocation6 + $0x8] sm:$0xff] (!%p990_p2)   ;;  %vm1455_vm3 = vmmov (!%p990_p2), 0  }
  0xec   : > { %1199 = vset.pattern.permute.xlu0 (!%p990_p2), %v1453_v13  ;;  %1060 = vmatprep.subr.bf16.mxu0 (!%p990_p2), %v1454_v14  ;;  %v1202_v16 = vld [vmem:[#allocation6 + $0x10] sm:$0xff] (!%p990_p2)   ;;  %v1208_v17 = vld [vmem:[#allocation9] sm:$0xff] (!%p990_p2)   ;;  %v1203_v18 = vld [vmem:[#allocation6 + $0x18] sm:$0xff] (!%p990_p2)  }
  0xed   : > { %511 = vperm.xlu0 (!%p990_p2), %1199, %v508_v11   ;;  %1061 = vmatpush3.bf16.msra.mxu0 (!%p990_p2), %v1200_v12  ;;  %v1209_v19 = vld [vmem:[#allocation9 + $0x8] sm:$0xff] (!%p990_p2)   ;;  %v1204_v20 = vld [vmem:[#allocation6 + $0x20] sm:$0xff] (!%p990_p2)   ;;  %v1210_v21 = vld [vmem:[#allocation9 + $0x10] sm:$0xff] (!%p990_p2)  }
  0xee   : > { %1062 = vmatprep.subr.bf16.mxu0 (!%p990_p2), %v1454_v14  ;;  %1080 = vmatprep.subr.bf16.mxu1 (!%p990_p2), %v1454_v14  ;;  %v1205_v22 = vld [vmem:[#allocation6 + $0x28] sm:$0xff] (!%p990_p2)   ;;  %v1211_v23 = vld [vmem:[#allocation9 + $0x18] sm:$0xff] (!%p990_p2)   ;;  %v1206_v24 = vld [vmem:[#allocation6 + $0x30] sm:$0xff] (!%p990_p2)  }
  0xef   : > { %1076 = vmatprep.mubr.msk.bf16.mxu0 (!%p990_p2), %vm1455_vm3, %v1454_v14  ;;  %1096 = vmatprep.mubr.msk.bf16.mxu1 (!%p990_p2), %vm1455_vm3, %v1454_v14  ;;  %v1212_v25 = vld [vmem:[#allocation9 + $0x20] sm:$0xff] (!%p990_p2)   ;;  %v1207_v26 = vld [vmem:[#allocation6 + $0x38] sm:$0xff] (!%p990_p2)   ;;  %v1213_v27 = vld [vmem:[#allocation9 + $0x28] sm:$0xff] (!%p990_p2)  }
  0xf0   : > { %1081 = vmatpush3.bf16.msra.mxu1 (!%p990_p2), %v1208_v17  ;;  %v1214_v32 = vld [vmem:[#allocation9 + $0x30] sm:$0xff] (!%p990_p2)   ;;  %v1215_v33 = vld [vmem:[#allocation9 + $0x38] sm:$0xff] (!%p990_p2)   ;;  %v1216_v34 = vld [vmem:[#allocation11] sm:$0xff] (!%p990_p2)  }
  0xf1   : > { %1063 = vmatpush3.bf16.msra.mxu0 (!%p990_p2), %v1201_v15  ;;  %1082 = vmatprep.subr.bf16.mxu1 (!%p990_p2), %v1454_v14  ;;  %v1217_v35 = vld [vmem:[#allocation11 + $0x8] sm:$0xff] (!%p990_p2)   ;;  %v1218_v36 = vld [vmem:[#allocation11 + $0x10] sm:$0xff] (!%p990_p2)   ;;  %v1219_v37 = vld [vmem:[#allocation11 + $0x18] sm:$0xff] (!%p990_p2)  }
  0xf2   : > { %1064 = vmatprep.subr.bf16.mxu0 (!%p990_p2), %v1454_v14  ;;  %v1220_v38 = vld [vmem:[#allocation11 + $0x20] sm:$0xff] (!%p990_p2)   ;;  %v1221_v39 = vld [vmem:[#allocation11 + $0x28] sm:$0xff] (!%p990_p2)   ;;  %v991_v40 = vld [vmem:[%s1775_s4] ss:$0 sm:$0xff] (!%p990_p2) }
  0xf3   : > { %v1222_v48 = vld [vmem:[#allocation11 + $0x30] sm:$0xff] (!%p990_p2)   ;;  %v1223_v49 = vld [vmem:[#allocation11 + $0x38] sm:$0xff] (!%p990_p2)  }
  0xf4   : > { %1083 = vmatpush3.bf16.msra.mxu1 (!%p990_p2), %v1209_v19  ;;  %v1000_v50 = vld [vmem:[%s1777_s6] ss:$0 sm:$0xff] (!%p990_p2) }
  0xf5   : > { %1065 = vmatpush3.bf16.msra.mxu0 (!%p990_p2), %v1202_v16  ;;  %1084 = vmatprep.subr.bf16.mxu1 (!%p990_p2), %v1454_v14  ;;  %v1009_v58 = vld [vmem:[%s1779_s8] ss:$0 sm:$0xff] (!%p990_p2) }
  0xf6   : > { %1066 = vmatprep.subr.bf16.mxu0 (!%p990_p2), %v1454_v14 }
  0xf8   : > { %1085 = vmatpush3.bf16.msra.mxu1 (!%p990_p2), %v1210_v21 }
  0xf9   : > { %1067 = vmatpush3.bf16.msra.mxu0 (!%p990_p2), %v1203_v18  ;;  %1086 = vmatprep.subr.bf16.mxu1 (!%p990_p2), %v1454_v14 }
  0xfa   : > { %1068 = vmatprep.subr.bf16.mxu0 (!%p990_p2), %v1454_v14 }
  0xfc   : > { %1087 = vmatpush3.bf16.msra.mxu1 (!%p990_p2), %v1211_v23 }
  0xfd   : > { %1069 = vmatpush3.bf16.msra.mxu0 (!%p990_p2), %v1204_v20  ;;  %1088 = vmatprep.subr.bf16.mxu1 (!%p990_p2), %v1454_v14 }
  0xfe   : > { %1070 = vmatprep.subr.bf16.mxu0 (!%p990_p2), %v1454_v14 }
 0x100   : > { %1089 = vmatpush3.bf16.msra.mxu1 (!%p990_p2), %v1212_v25 }
 0x101   : > { %1071 = vmatpush3.bf16.msra.mxu0 (!%p990_p2), %v1205_v22  ;;  %1090 = vmatprep.subr.bf16.mxu1 (!%p990_p2), %v1454_v14 }
 0x102   : > { %1072 = vmatprep.subr.bf16.mxu0 (!%p990_p2), %v1454_v14 }
 0x104   : > { %1091 = vmatpush3.bf16.msra.mxu1 (!%p990_p2), %v1213_v27 }
 0x105   : > { %1073 = vmatpush3.bf16.msra.mxu0 (!%p990_p2), %v1206_v24  ;;  %1092 = vmatprep.subr.bf16.mxu1 (!%p990_p2), %v1454_v14 }
 0x106   : > { %1074 = vmatprep.subr.bf16.mxu0 (!%p990_p2), %v1454_v14 }
 0x108   : > { %1093 = vmatpush3.bf16.msra.mxu1 (!%p990_p2), %v1214_v32 }
 0x109   : > { %1075 = vmatpush3.bf16.msra.mxu0 (!%p990_p2), %v1207_v26  ;;  %1094 = vmatprep.subr.bf16.mxu1 (!%p990_p2), %v1454_v14 }
 0x10a   : > { %1100 = vmatprep.subr.bf16.mxu0 (!%p990_p2), %v1454_v14 }
 0x10c   : > { %1095 = vmatpush3.bf16.msra.mxu1 (!%p990_p2), %v1215_v33 }
 0x16c   : > { %v512_v29 = vpop.permute.xlu0 (!%p990_p2), %511 }
 0x1b9   : > { %506 = sbr.rel (%p990_p2) target bundleno = 1112 (0x458), region = 105 }
 0x1bc   : > { %v497_v8 = vpop.f32.mrb[0].mxu0 }
 0x1bd   : > { %v501_v9 = vadd.f32 %v497_v8, %v426_v7  ;;  %v1059_v10 = vpop.f32.mrb[1].mxu0 }
 0x1bf   : > { %502 = vst [vmem:[#allocation12] sm:$0xff] %v501_v9 }
 0x1c6   : > { %v507_v28 = vld [vmem:[#allocation12] sm:$0xff] }
 0x1c7   : > { %v514_v30 = vmul.f32 %v512_v29, %v507_v28 }
 0x1c9   : > { %v515_v31 = vpack.c.bf16 %v514_v30, %v514_v30 }
 0x1cb   : > { %1077 = vmatmul.mubr.bf16.vlgmr.msra.gmra.mrb[0].mxu0 %v515_v31 }
 0x1cc   : > { %1116 = vmatprep.mubr.msk.bf16.mxu0 %vm1455_vm3, %v1454_v14  ;;  %1101 = vmatpush3.bf16.msra.mxu0 %v1216_v34 }
 0x1cd   : > { %1102 = vmatprep.subr.bf16.mxu0 %v1454_v14 }
 0x1d0   : > { %1103 = vmatpush3.bf16.msra.mxu0 %v1217_v35 }
 0x1d1   : > { %1104 = vmatprep.subr.bf16.mxu0 %v1454_v14 }
 0x1d4   : > { %1105 = vmatpush3.bf16.msra.mxu0 %v1218_v36 }
 0x1d5   : > { %1106 = vmatprep.subr.bf16.mxu0 %v1454_v14 }
 0x1d8   : > { %1107 = vmatpush3.bf16.msra.mxu0 %v1219_v37 }
 0x1d9   : > { %1108 = vmatprep.subr.bf16.mxu0 %v1454_v14 }
 0x1dc   : > { %1109 = vmatpush3.bf16.msra.mxu0 %v1220_v38 }
 0x1dd   : > { %1110 = vmatprep.subr.bf16.mxu0 %v1454_v14 }
 0x1e0   : > { %1111 = vmatpush3.bf16.msra.mxu0 %v1221_v39 }
 0x1e1   : > { %1112 = vmatprep.subr.bf16.mxu0 %v1454_v14 }
 0x1e4   : > { %1113 = vmatpush3.bf16.msra.mxu0 %v1222_v48 }
 0x1e5   : > { %1114 = vmatprep.subr.bf16.mxu0 %v1454_v14 }
 0x1e8   : > { %1115 = vmatpush3.bf16.msra.mxu0 %v1223_v49 }
 0x29e   : > { %v621_v41 = vpop.f32.mrb[0].mxu0 }
 0x29f   : > { %v622_v42 = vadd.f32 %v991_v40, %v621_v41  ;;  %v1078_v43 = vpop.f32.mrb[1].mxu0 }
 0x2a0   : > { %v624_v44 = vpop.f32.mrb[2].mxu0 }
 0x2a1   : > { %v627_v45 = vmax.f32 %v622_v42, 0.0  ;;  %v1079_v46 = vpop.f32.mrb[3].mxu0 }
 0x2a3   : > { %v628_v47 = vpack.c.bf16 %v627_v45, %v627_v45 }
 0x2a5   : > { %1097 = vmatmul.mubr.bf16.vlgmr.msra.gmra.mrb[0].mxu1 %v628_v47 }
 0x378   : > { %v734_v51 = vpop.f32.mrb[0].mxu1 }
 0x379   : > { %v735_v52 = vadd.f32 %v1000_v50, %v734_v51  ;;  %v1098_v53 = vpop.f32.mrb[1].mxu1 }
 0x37a   : > { %v737_v54 = vpop.f32.mrb[2].mxu1 }
 0x37b   : > { %v740_v55 = vmax.f32 %v735_v52, 0.0  ;;  %v1099_v56 = vpop.f32.mrb[3].mxu1 }
 0x37d   : > { %v741_v57 = vpack.c.bf16 %v740_v55, %v740_v55 }
 0x37f   : > { %1117 = vmatmul.mubr.bf16.vlgmr.msra.gmra.mrb[4].mxu0 %v741_v57 }
 0x452   : > { %v847_v59 = vpop.f32.mrb[4].mxu0 }
 0x453   : > { %v848_v60 = vadd.f32 %v1009_v58, %v847_v59  ;;  %v1118_v61 = vpop.f32.mrb[5].mxu0 }
 0x454   : > { %v850_v62 = vpop.f32.mrb[6].mxu0 }
 0x455   : > { %v853_v63 = vmax.f32 %v848_v60, 0.0  ;;  %v1119_v0 = vpop.f32.mrb[7].mxu0 }
 0x457   : > { %854 = vst [vmem:[#allocation12] sm:$0xff] %v853_v63 }
 0x458 PF: > { %p1152_p3 = scmp.eq.s32.totalorder %s1521_s0, 1  ;;  %s1456_s20 = smov [#allocation12]  }
 0x459   : > { %s862_s22 = sshll.u32 %s1456_s20, 4  ;;  %s863_s22 = int_to_ptr.vmem [resolvable:$true] %s862_s22 }
 0x45a   : > { %s1368_s16 = scalar_lea.vmem %s863_s22, 128  ;;  %p1375_p10 = scmp.lt.s32.totalorder %s863_s22, %s863_s22 }
 0x45b   : > { %p1369_p4 = scmp.ne.s32.totalorder %s863_s22, %s1368_s16  ;;  %p1376_p7 = scmp.lt.s32.totalorder %s1368_s16, %s1368_s16 }
 0x45d   : > { %p1370_p5 = pnand %p1369_p4, %p1152_p3  ;;  %p1377_p13 = por %p1376_p7, %p1375_p10 }
 0x45f   : > { %p1371_p6 = pneg %p1370_p5 }
 0x461   : > { %p1378_p8 = pnand %p1377_p13, %p1371_p6 }
 0x463   : > { %1381 = shalt.err (!%p1378_p8)
}
 0x464   : > { %s1382_s23 = scalar_lea.hbm %s1781_s10, 128 }
 0x465   : > { %p1383_p9 = scmp.ne.s32.totalorder %s1781_s10, %s1382_s23  ;;  %p1388_p11 = scmp.lt.u32.totalorder %s1382_s23, %s1781_s10 }
 0x467   : > { %p1384_p12 = pnand %p1383_p9, %p1152_p3 }
 0x469   : > { %p1385_p0 = pneg %p1384_p12 }
 0x46b   : > { %p1390_p1 = pnand %p1388_p11, %p1385_p0 }
 0x46d   : > { %1393 = shalt.err (!%p1390_p1)
}
 0x46e   : > { %1133 = dma.vmem_to_hbm [thread:$0]  (%p1152_p3), %s863_s22, 128, %s1781_s10, [#allocation8]  }
 0x46f   : > { %1423 = dma.done.wait (%p1152_p3), [#allocation8], 128  }
 0x470   : > { %1425 = vsyncadd (%p1152_p3), [#allocation8], 4294967168 }
 0x471 PF: > { %s29_s18 = sadd.s32 1, %s1428_s18  }
 0x472   : > { %p26_p2 = scmp.ge.s32.totalorder %s29_s18, 4  }
 0x474   :  { %28 = sbr.rel (!%p26_p2) target bundleno = 19 (0x13), region = 174 }
 0x47b   :  { %875 = vsyncpa [#allocation7], 1 }
 0x47c   :  { %877 = vsyncpa [#allocation7 + $0x1], 1 }
 0x47d   :  { %878 = vsyncpa [#allocation10], 1 }
 0x47e   :  { %879 = vsyncpa [#allocation8], 1 }
 0x47f   :  { %881 = vsyncpa [#allocation8 + $0x1], 1 }
 0x480   :  { %882 = vsyncmov [#allocation3] }
 0x483   :  { %s883_s25 = vpop.sfrf %882 }
 0x484   :  { %p1022_p4 = scmp.ne.s32.totalorder %s883_s25, 0 }
 0x486   :  { %887 = shalt.err (%p1022_p4)  }
 0x487   :  { %889 = vsyncmov [#allocation3 + $0x1] }
 0x48a   :  { %s890_s28 = vpop.sfrf %889 }
 0x48b   :  { %p1023_p5 = scmp.ne.s32.totalorder %s890_s28, 0 }
 0x48d   :  { %894 = shalt.err (%p1023_p5)  }

</bundles_post_ra>
